<compile_context>
chip_gen: v7x
topology: tpu7x:2x2x1
jax: 0.10.0
libtpu: 0.0.40
codegen_flags: <defaults>
</compile_context>

<pallas_src>
import functools

import jax
import jax.numpy as jnp
from jax.experimental import pallas as pl
from jax.experimental.pallas import tpu as pltpu


_VMEM_LIMIT_BYTES = 40 << 20          # safe on v5e/v6e (128 MiB) and v7x (64 MiB)
_TARGET_TILE = 512                    # sweep {256, 512, 1024} per generation
_FUSE_MAX_IN_FEATURES = 512           # fuse support-compute into adj matmul when cheap
_RESIDENT_SUPPORT_BYTES = 12 << 20    # keep support VMEM-resident up to this size


def _round_up(x, m):
    return ((x + m - 1) // m) * m


def _pick_tile(n_pad, target):
    """Largest multiple of 128 that divides n_pad and is <= target."""
    best = 128
    for cand in range(128, min(target, n_pad) + 1, 128):
        if n_pad % cand == 0:
            best = cand
    return best


def _apply_act(x, act):
    if act == "tanh":
        return jnp.tanh(x)
    if act == "leaky_relu":
        return jnp.where(x >= 0, x, 0.2 * x)
    return x


# ---------------------------------------------------------------------------
# Fused kernel:  out[i-tile] += adj[i-tile, k-tile] @ act(features[k-tile] @ W)
# ---------------------------------------------------------------------------
def _fused_gnn_kernel(adj_ref, feat_ref, w_ref, o_ref, *, act, n_k):
    if n_k > 1:
        @pl.when(pl.program_id(1) == 0)
        def _init():
            o_ref[...] = jnp.zeros_like(o_ref)

    # support k-tile computed on the fly; W is tiny and VMEM-resident.
    s = jnp.dot(feat_ref[...], w_ref[...], preferred_element_type=jnp.float32)
    s = _apply_act(s, act)
    if adj_ref.dtype != jnp.float32:
        s = s.astype(adj_ref.dtype)          # bf16 adj path: bf16 MXU, f32 acc
    part = jnp.dot(adj_ref[...], s, preferred_element_type=jnp.float32)

    if n_k == 1:
        o_ref[...] = part
    else:
        o_ref[...] += part


def _fused_forward(adj_p, feats_p, w_p, act, tm, tk):
    Mp, Kp = adj_p.shape
    _, Fin = feats_p.shape
    _, Dp = w_p.shape
    n_k = Kp // tk
    kernel = functools.partial(_fused_gnn_kernel, act=act, n_k=n_k)
    return pl.pallas_call(
        kernel,
        out_shape=jax.ShapeDtypeStruct((Mp, Dp), jnp.float32),
        grid_spec=pltpu.PrefetchScalarGridSpec(
            num_scalar_prefetch=0,
            grid=(Mp // tm, n_k),
            in_specs=[
                pl.BlockSpec((tm, tk), lambda i, k: (i, k)),    # adj tile
                pl.BlockSpec((tk, Fin), lambda i, k: (k, 0)),   # features k-tile
                pl.BlockSpec((Fin, Dp), lambda i, k: (0, 0)),   # W, resident
            ],
            out_specs=pl.BlockSpec((tm, Dp), lambda i, k: (i, 0)),
        ),
        compiler_params=pltpu.CompilerParams(
            dimension_semantics=("parallel", "arbitrary"),
            vmem_limit_bytes=_VMEM_LIMIT_BYTES,
        ),
    )(adj_p, feats_p, w_p)


# ---------------------------------------------------------------------------
# Unfused path (large in_features): support kernel + adj @ support kernel
# ---------------------------------------------------------------------------
def _support_kernel(f_ref, w_ref, o_ref, *, act):
    s = jnp.dot(f_ref[...], w_ref[...], preferred_element_type=jnp.float32)
    o_ref[...] = _apply_act(s, act).astype(o_ref.dtype)


def _support_matmul(feats_p, w_p, act, tm, out_dtype):
    Mp, Fin = feats_p.shape
    _, Dp = w_p.shape
    kernel = functools.partial(_support_kernel, act=act)
    return pl.pallas_call(
        kernel,
        out_shape=jax.ShapeDtypeStruct((Mp, Dp), out_dtype),
        grid_spec=pltpu.PrefetchScalarGridSpec(
            num_scalar_prefetch=0,
            grid=(Mp // tm,),
            in_specs=[
                pl.BlockSpec((tm, Fin), lambda i: (i, 0)),
                pl.BlockSpec((Fin, Dp), lambda i: (0, 0)),      # W, resident
            ],
            out_specs=pl.BlockSpec((tm, Dp), lambda i: (i, 0)),
        ),
        compiler_params=pltpu.CompilerParams(
            dimension_semantics=("parallel",),
            vmem_limit_bytes=_VMEM_LIMIT_BYTES,
        ),
    )(feats_p, w_p)


def _adj_support_resident_kernel(a_ref, b_ref, o_ref, *, tk, n_k):
    k = pl.program_id(1)
    if n_k > 1:
        @pl.when(k == 0)
        def _init():
            o_ref[...] = jnp.zeros_like(o_ref)
    off = pl.multiple_of(k * tk, tk)
    b = b_ref[pl.ds(off, tk), :]           # slice of the VMEM-resident support
    part = jnp.dot(a_ref[...], b, preferred_element_type=jnp.float32)
    if n_k == 1:
        o_ref[...] = part
    else:
        o_ref[...] += part


def _adj_support_tiled_kernel(a_ref, b_ref, o_ref, *, n_k):
    if n_k > 1:
        @pl.when(pl.program_id(1) == 0)
        def _init():
            o_ref[...] = jnp.zeros_like(o_ref)
    part = jnp.dot(a_ref[...], b_ref[...], preferred_element_type=jnp.float32)
    if n_k == 1:
        o_ref[...] = part
    else:
        o_ref[...] += part


def _adj_matmul(adj_p, support_p, tm, tk):
    Mp, Kp = adj_p.shape
    _, Dp = support_p.shape
    n_k = Kp // tk
    support_bytes = Kp * Dp * support_p.dtype.itemsize
    if support_bytes <= _RESIDENT_SUPPORT_BYTES:
        kernel = functools.partial(_adj_support_resident_kernel, tk=tk, n_k=n_k)
        b_spec = pl.BlockSpec((Kp, Dp), lambda i, k: (0, 0))    # fully resident
    else:
        kernel = functools.partial(_adj_support_tiled_kernel, n_k=n_k)
        b_spec = pl.BlockSpec((tk, Dp), lambda i, k: (k, 0))
    return pl.pallas_call(
        kernel,
        out_shape=jax.ShapeDtypeStruct((Mp, Dp), jnp.float32),
        grid_spec=pltpu.PrefetchScalarGridSpec(
            num_scalar_prefetch=0,
            grid=(Mp // tm, n_k),
            in_specs=[
                pl.BlockSpec((tm, tk), lambda i, k: (i, k)),    # adj tile
                b_spec,
            ],
            out_specs=pl.BlockSpec((tm, Dp), lambda i, k: (i, 0)),
        ),
        compiler_params=pltpu.CompilerParams(
            dimension_semantics=("parallel", "arbitrary"),
            vmem_limit_bytes=_VMEM_LIMIT_BYTES,
        ),
    )(adj_p, support_p)


# ---------------------------------------------------------------------------
# Wrapper
# ---------------------------------------------------------------------------
def prepare_adj(adj, n_pad=None, dtype=jnp.float32):
    """One-time pad/cast of the adjacency.

    adj is reused every layer / epoch: call this once where adj is built and
    cache the result so the per-call N^2 cast/pad passes disappear.  The
    forward below detects an already-prepared adj and skips the work.
    """
    n = adj.shape[0]
    if n_pad is None:
        n_pad = _round_up(n, 128)
    if adj.shape == (n_pad, n_pad) and adj.dtype == dtype:
        return adj
    adj = adj.astype(dtype)
    if adj.shape != (n_pad, n_pad):
        adj = jnp.pad(adj, ((0, n_pad - adj.shape[0]), (0, n_pad - adj.shape[1])))
    return adj


def gnn_layer_forward(name, features, adj, weight, active=False,
                      target_tile=_TARGET_TILE, use_bf16_adj=False,
                      force_unfused=False):
    """Forward pass of GNNLayer. features: [N, in_f], adj: [N, N] (or prepared)."""
    N, in_f = features.shape
    if name in ("dblp", "hhar"):
        w = weight.T          # F.linear: features @ W.T; done ONCE, outside kernels
        act = "tanh"
    elif name == "reut":
        w = weight
        act = "leaky_relu"
    else:                     # 'usps', 'acm', 'cite', 'cora', default
        w = weight
        act = "tanh"
    if not active:
        act = None
    out_f = w.shape[1]

    # 128-granular padding only (zero rows/cols contribute nothing; output
    # padding is sliced off).  D padded to 128 keeps stores lane-dense.
    N_pad = _round_up(N, 128)
    D_pad = _round_up(out_f, 128)

    adj_dtype = jnp.bfloat16 if use_bf16_adj else jnp.float32
    adj_p = prepare_adj(adj, N_pad, adj_dtype)   # no-op if prepared upstream

    feats_p = features.astype(jnp.float32)
    if N_pad != N:
        feats_p = jnp.pad(feats_p, ((0, N_pad - N), (0, 0)))
    w_p = w.astype(jnp.float32)
    if D_pad != out_f:
        w_p = jnp.pad(w_p, ((0, 0), (0, D_pad - out_f)))

    # Tile selection: tiles divide N_pad exactly (no ragged / OOB blocks);
    # guarantee >=2 row tiles when possible so v7x's two TCs both run.
    tm = _pick_tile(N_pad, target_tile)
    if N_pad // tm == 1 and N_pad >= 256:
        tm = _pick_tile(N_pad, max(128, N_pad // 2))
    tk = tm

    fuse = (not force_unfused) and (in_f <= _FUSE_MAX_IN_FEATURES)
    if fuse:
        out_p = _fused_forward(adj_p, feats_p, w_p, act, tm, tk)
    else:
        # Cap the features row-tile so the (tm1 x in_f) f32 block stays ~<=6 MiB.
        rows_budget = max(128, ((6 << 20) // (in_f * 4)) // 128 * 128)
        tm1 = _pick_tile(N_pad, min(tm, rows_budget))
        support_dtype = adj_dtype if use_bf16_adj else jnp.float32
        support_p = _support_matmul(feats_p, w_p, act, tm1, support_dtype)
        out_p = _adj_matmul(adj_p, support_p, tm, tk)

    if N_pad != N or D_pad != out_f:
        out_p = out_p[:N, :out_f]
    return out_p


def xavier_uniform(key, shape):
    """Matches torch.nn.init.xavier_uniform_ fan computation for 2-D weights."""
    fan_out, fan_in = shape[0], shape[1]
    bound = (6.0 / (fan_in + fan_out)) ** 0.5
    return jax.random.uniform(key, shape, jnp.float32, minval=-bound, maxval=bound)


if __name__ == "__main__":
    key = jax.random.PRNGKey(0)
    k_feat, k_adj, k_w1, k_w2, k_w3 = jax.random.split(key, 5)

    N, in_features, out_features = 64, 32, 16

    features = jax.random.normal(k_feat, (N, in_features), jnp.float32)
    adj_raw = jax.random.uniform(k_adj, (N, N), jnp.float32)
    adj = adj_raw / jnp.sum(adj_raw, axis=1, keepdims=True)  # row-normalized adjacency

    # Upstream one-time prep (cacheable across layers / epochs).
    adj_prepared = prepare_adj(adj)

    # Path 1: 'acm' — weight (in, out), Tanh, active=True (fused kernel)
    w_acm = xavier_uniform(k_w1, (in_features, out_features))
    out_acm = jax.block_until_ready(
        gnn_layer_forward("acm", features, adj_prepared, w_acm, active=True))
    ref_acm = adj @ jnp.tanh(features @ w_acm)
    assert out_acm.shape == (N, out_features)
    assert jnp.allclose(out_acm, ref_acm, atol=1e-5, rtol=1e-5), "acm mismatch"

    # Path 2: 'dblp' — weight (out, in), F.linear, active=False (no activation)
    w_dblp = xavier_uniform(k_w2, (out_features, in_features))
    out_dblp = jax.block_until_ready(
        gnn_layer_forward("dblp", features, adj_prepared, w_dblp, active=False))
    ref_dblp = adj @ (features @ w_dblp.T)
    assert out_dblp.shape == (N, out_features)
    assert jnp.allclose(out_dblp, ref_dblp, atol=1e-5, rtol=1e-5), "dblp mismatch"

    # Path 3: 'reut' — LeakyReLU(0.2), active=True
    w_reut = xavier_uniform(k_w3, (in_features, out_features))
    out_reut = jax.block_until_ready(
        gnn_layer_forward("reut", features, adj_prepared, w_reut, active=True))
    h = features @ w_reut
    ref_reut = adj @ jnp.where(h >= 0, h, 0.2 * h)
    assert jnp.allclose(out_reut, ref_reut, atol=1e-5, rtol=1e-5), "reut mismatch"

    # Path 4: unfused fallback (large-in_features code path), f32
    out_unf = jax.block_until_ready(
        gnn_layer_forward("acm", features, adj_prepared, w_acm, active=True,
                          force_unfused=True))
    assert jnp.allclose(out_unf, ref_acm, atol=1e-5, rtol=1e-5), "unfused mismatch"

    # Path 5: opt-in bf16 adj path (looser tolerance; f32 accumulation)
    adj_bf16 = prepare_adj(adj, dtype=jnp.bfloat16)   # cast once upstream
    out_bf16 = jax.block_until_ready(
        gnn_layer_forward("acm", features, adj_bf16, w_acm, active=True,
                          use_bf16_adj=True))
    assert jnp.allclose(out_bf16, ref_acm, atol=5e-2, rtol=5e-2), "bf16 mismatch"

    print("KERNEL_OK")
</pallas_src>

<mosaic_0001>
module attributes {stable_mosaic.version = 11 : i64} {
  func.func @_fused_gnn_kernel(%arg0: i32, %arg1: i32, %arg2: memref<128x128xf32, #tpu.memory_space<vmem>>, %arg3: memref<128x32xf32, #tpu.memory_space<vmem>>, %arg4: memref<32x128xf32, #tpu.memory_space<vmem>>, %arg5: memref<128x128xf32, #tpu.memory_space<vmem>>) attributes {dimension_semantics = [#tpu.dimension_semantics<parallel>, #tpu.dimension_semantics<arbitrary>], iteration_bounds = array<i64: 1, 1>, scalar_prefetch = 0 : i64, scratch_operands = 0 : i64, tpu.core_type = #tpu.core_type<tc>, window_params = [{transform_indices = @transform_0, window_bounds = array<i64: 128, 128>}, {transform_indices = @transform_1, window_bounds = array<i64: 128, 32>}, {pipeline_mode = #tpu.pipeline_mode<synchronous>, transform_indices = @transform_2, window_bounds = array<i64: 32, 128>}, {transform_indices = @transform_3, window_bounds = array<i64: 128, 128>}]} {
    %c0 = arith.constant 0 : index
    %c0_0 = arith.constant 0 : index
    %0 = vector.load %arg3[%c0, %c0_0] : memref<128x32xf32, #tpu.memory_space<vmem>>, vector<128x32xf32>
    %c0_1 = arith.constant 0 : index
    %c0_2 = arith.constant 0 : index
    %1 = vector.load %arg4[%c0_1, %c0_2] : memref<32x128xf32, #tpu.memory_space<vmem>>, vector<32x128xf32>
    %cst = arith.constant dense<0.000000e+00> : vector<128x128xf32>
    %2 = tpu.matmul %0, %1, %cst {dimension_numbers = #tpu.dot_dimension_numbers<[1], [0], [0], [1], [0, 0, 1, 1], [], []>} : vector<128x32xf32>, vector<32x128xf32>, vector<128x128xf32> -> vector<128x128xf32>
    %3 = math.tanh %2 : vector<128x128xf32>
    %c0_3 = arith.constant 0 : index
    %c0_4 = arith.constant 0 : index
    %4 = vector.load %arg2[%c0_3, %c0_4] : memref<128x128xf32, #tpu.memory_space<vmem>>, vector<128x128xf32>
    %cst_5 = arith.constant dense<0.000000e+00> : vector<128x128xf32>
    %5 = tpu.matmul %4, %3, %cst_5 {dimension_numbers = #tpu.dot_dimension_numbers<[1], [0], [0], [1], [0, 0, 1, 1], [], []>} : vector<128x128xf32>, vector<128x128xf32>, vector<128x128xf32> -> vector<128x128xf32>
    %c0_6 = arith.constant 0 : index
    %c0_7 = arith.constant 0 : index
    %6 = vector.load %arg5[%c0_6, %c0_7] : memref<128x128xf32, #tpu.memory_space<vmem>>, vector<128x128xf32>
    tpu.vector_store %arg5[%c0_6, %c0_7], %5 {strides = array<i32>} : memref<128x128xf32, #tpu.memory_space<vmem>>, vector<128x128xf32>,
    return
  }
  func.func @transform_0(%arg0: i32, %arg1: i32) -> (i32, i32) {
    %c0_i32 = arith.constant 0 : i32
    return %arg0, %arg1 : i32, i32
  }
  func.func @transform_1(%arg0: i32, %arg1: i32) -> (i32, i32) {
    %c0_i32 = arith.constant 0 : i32
    %c0_i32_0 = arith.constant 0 : i32
    return %arg1, %c0_i32 : i32, i32
  }
  func.func @transform_2(%arg0: i32, %arg1: i32) -> (i32, i32) {
    %c0_i32 = arith.constant 0 : i32
    %c0_i32_0 = arith.constant 0 : i32
    %c0_i32_1 = arith.constant 0 : i32
    return %c0_i32, %c0_i32_0 : i32, i32
  }
  func.func @transform_3(%arg0: i32, %arg1: i32) -> (i32, i32) {
    %c0_i32 = arith.constant 0 : i32
    %c0_i32_0 = arith.constant 0 : i32
    return %arg0, %c0_i32 : i32, i32
  }
}

</mosaic_0001>

<bundles_post_ra>
// kernel: tpu_custom_call.1
= control target key start
LH: loop header
LB: loop body
LE: loop exit
PB: predicated region body
PF: predicated region fallthrough
CT: control target
= control target key end

     0   :  { %vm35_vm0 = vcmask 261120   ;;  %s868_s0 = inlined_call_operand.vmem [shape: f32[128,128], index: 0, kind: input, shape index: {}]   ;;  %s869_s1 = inlined_call_operand.vmem [shape: f32[128,32], index: 1, kind: input, shape index: {}]   ;;  %s870_s2 = inlined_call_operand.vmem [shape: f32[32,128], index: 2, kind: input, shape index: {}]   ;;  %s871_s3 = inlined_call_operand.hbm [shape: f32[128,128], index: 3, kind: output, shape index: {}]  }
   0x1   :  { %v31_v0 = vld [vmem:[%s870_s2] sm:$0xff]  ;;  %v32_v1 = vld [vmem:[%s870_s2 + $0x8] sm:$0xff]  ;;  %v33_v2 = vld [vmem:[%s870_s2 + $0x10] sm:$0xff] }
   0x2   :  { %v594_v3 = vpack.c.bf16 %v32_v1, %v31_v0  ;;  %v34_v4 = vld [vmem:[%s870_s2 + $0x18] sm:$0xff]  ;;  %v15_v5 = vld [vmem:[%s869_s1] sm:$0xff] }
   0x3   :  { %v598_v6 = vpack.c.bf16 %v34_v4, %v33_v2  ;;  %514 = vmatprep.mubr.msk.f32.mxu0 %vm35_vm0, %v15_v5 }
   0x4   :  { %595 = vmatprep.subr.bf16.mxu0 %v594_v3 }
   0x5   :  { %597 = vmatpush3.bf16.msra.mxu0 %v594_v3 }
   0x6   :  { %599 = vmatprep.subr.bf16.mxu0 %v598_v6 }
   0x7   :  { %8 = vsyncpa [#allocation3], 0  ;;  %v16_v7 = vld [vmem:[%s869_s1 + $0x8] sm:$0xff]  ;;  %v17_v8 = vld [vmem:[%s869_s1 + $0x10] sm:$0xff] }
   0x8   :  { %v18_v9 = vld [vmem:[%s869_s1 + $0x18] sm:$0xff]  ;;  %v19_v10 = vld [vmem:[%s869_s1 + $0x20] sm:$0xff]  ;;  %v20_v11 = vld [vmem:[%s869_s1 + $0x28] sm:$0xff] }
   0x9   :  { %601 = vmatpush3.bf16.msra.mxu0 %v598_v6  ;;  %v21_v12 = vld [vmem:[%s869_s1 + $0x30] sm:$0xff]  ;;  %v22_v13 = vld [vmem:[%s869_s1 + $0x38] sm:$0xff]  ;;  %v23_v14 = vld [vmem:[%s869_s1 + $0x40] sm:$0xff] }
   0xa   :  { %v24_v15 = vld [vmem:[%s869_s1 + $0x48] sm:$0xff]  ;;  %v25_v16 = vld [vmem:[%s869_s1 + $0x50] sm:$0xff]  ;;  %v26_v17 = vld [vmem:[%s869_s1 + $0x58] sm:$0xff] }
   0xb   :  { %v27_v18 = vld [vmem:[%s869_s1 + $0x60] sm:$0xff]  ;;  %v28_v19 = vld [vmem:[%s869_s1 + $0x68] sm:$0xff]  ;;  %v29_v20 = vld [vmem:[%s869_s1 + $0x70] sm:$0xff] }
   0xc   :  { %515 = vmatmul.mubr.msk.f32.vlgmr.msra.gmra.mrb[0].mxu0 %vm35_vm0, %v16_v7  ;;  %v30_v21 = vld [vmem:[%s869_s1 + $0x78] sm:$0xff]  ;;  %v251_v22 = vld [vmem:[%s868_s0 + $0x30] sm:$0xff]  ;;  %v245_v23 = vld [vmem:[%s868_s0] sm:$0xff] }
   0xd   :  { %517 = vmatprep.mubr.msk.f32.mxu0 %vm35_vm0, %v17_v8  ;;  %579 = vmatprep.mubr.f32.mxu1 %v251_v22  ;;  %v252_v0 = vld [vmem:[%s868_s0 + $0x38] sm:$0xff]  ;;  %v246_v1 = vld [vmem:[%s868_s0 + $0x8] sm:$0xff]  ;;  %v253_v2 = vld [vmem:[%s868_s0 + $0x40] sm:$0xff] }
   0xe   :  { %v247_v3 = vld [vmem:[%s868_s0 + $0x10] sm:$0xff]  ;;  %v254_v4 = vld [vmem:[%s868_s0 + $0x48] sm:$0xff]  ;;  %v248_v5 = vld [vmem:[%s868_s0 + $0x18] sm:$0xff] }
   0xf   :  { %v255_v6 = vld [vmem:[%s868_s0 + $0x50] sm:$0xff]  ;;  %v249_v7 = vld [vmem:[%s868_s0 + $0x20] sm:$0xff]  ;;  %v256_v8 = vld [vmem:[%s868_s0 + $0x58] sm:$0xff] }
  0x10   :  { %518 = vmatmul.mubr.msk.f32.gmra.mrb[2].mxu0 %vm35_vm0, %v18_v9  ;;  %v250_v9 = vld [vmem:[%s868_s0 + $0x28] sm:$0xff] }
  0x11   :  { %520 = vmatprep.mubr.msk.f32.mxu0 %vm35_vm0, %v19_v10  ;;  %v257_v10 = vld [vmem:[%s868_s0 + $0x60] sm:$0xff] }
  0x14   :  { %521 = vmatmul.mubr.msk.f32.gmra.mrb[4].mxu0 %vm35_vm0, %v20_v11  ;;  %v258_v11 = vld [vmem:[%s868_s0 + $0x68] sm:$0xff] }
  0x15   :  { %523 = vmatprep.mubr.msk.f32.mxu0 %vm35_vm0, %v21_v12  ;;  %v259_v12 = vld [vmem:[%s868_s0 + $0x70] sm:$0xff] }
  0x18   :  { %524 = vmatmul.mubr.msk.f32.gmra.mrb[6].mxu0 %vm35_vm0, %v22_v13  ;;  %v260_v13 = vld [vmem:[%s868_s0 + $0x78] sm:$0xff]  ;;  %s709_s0 = smov [#allocation2]  }
  0x19   :  { %526 = vmatprep.mubr.msk.f32.mxu0 %vm35_vm0, %v23_v14  ;;  %s427_s26 = sshll.u32 %s709_s0, 4  ;;  %s428_s26 = int_to_ptr.vmem [resolvable:$true] %s427_s26 }
  0x1a   :  { %s685_s1 = scalar_lea.vmem %s428_s26, 2048  ;;  %p690_p1 = scmp.lt.s32.totalorder %s428_s26, %s428_s26 }
  0x1b   :  { %p686_p0 = scmp.ne.s32.totalorder %s428_s26, %s685_s1  ;;  %p691_p2 = scmp.lt.s32.totalorder %s685_s1, %s685_s1 }
  0x1c   :  { %527 = vmatmul.mubr.msk.f32.gmra.mrb[8].mxu0 %vm35_vm0, %v24_v15 }
  0x1d   :  { %529 = vmatprep.mubr.msk.f32.mxu0 %vm35_vm0, %v25_v16  ;;  %p692_p3 = por %p691_p2, %p690_p1 }
  0x1f   :  { %p693_p4 = pnand %p692_p3, %p686_p0 }
  0x20   :  { %530 = vmatmul.mubr.msk.f32.gmra.mrb[10].mxu0 %vm35_vm0, %v26_v17 }
  0x21   :  { %532 = vmatprep.mubr.msk.f32.mxu0 %vm35_vm0, %v27_v18 }
  0x24   :  { %533 = vmatmul.mubr.msk.f32.gmra.mrb[12].mxu0 %vm35_vm0, %v28_v19 }
  0x25   :  { %535 = vmatprep.mubr.msk.f32.mxu0 %vm35_vm0, %v29_v20 }
  0x28   :  { %536 = vmatmul.mubr.msk.f32.gmra.mrb[14].mxu0 %vm35_vm0, %v30_v21 }
  0x29   :  { %570 = vmatprep.mubr.f32.mxu0 %v245_v23 }
  0xdf   :  { %v516_v24 = vpop.f32.mrb[0].mxu0 }
  0xe0   :  { %653 = vtanh.f32 %v516_v24  ;;  %v150_v25 = vpop.f32.mrb[1].mxu0 }
  0xe1   :  { %655 = vtanh.f32 %v150_v25 }
  0xe3   :  { %v519_v26 = vpop.f32.mrb[2].mxu0 }
  0xe4   :  { %657 = vtanh.f32 %v519_v26  ;;  %v160_v27 = vpop.f32.mrb[3].mxu0 }
  0xe5   :  { %659 = vtanh.f32 %v160_v27 }
  0xe7   :  { %v522_v28 = vpop.f32.mrb[4].mxu0 }
  0xe8   :  { %661 = vtanh.f32 %v522_v28  ;;  %v170_v29 = vpop.f32.mrb[5].mxu0 }
  0xe9   :  { %663 = vtanh.f32 %v170_v29 }
  0xea   :  { %v654_v30 = vpop.eup %653 }
  0xeb   :  { %v656_v31 = vpop.eup %655  ;;  %v525_v32 = vpop.f32.mrb[6].mxu0 }
  0xec   :  { %665 = vtanh.f32 %v525_v32  ;;  %v180_v33 = vpop.f32.mrb[7].mxu0  ;;  %v602_v34 = vpack.c.bf16 %v654_v30, %v656_v31 }
  0xed   :  { %667 = vtanh.f32 %v180_v33 }
  0xee   :  { %v658_v35 = vpop.eup %657  ;;  %603 = vmatprep.subr.bf16.mxu0 %v602_v34  ;;  %634 = vmatprep.subr.bf16.mxu1 %v602_v34 }
  0xef   :  { %v660_v36 = vpop.eup %659  ;;  %v528_v37 = vpop.f32.mrb[8].mxu0  ;;  %605 = vmatpush3.bf16.msra.mxu0 %v602_v34  ;;  %642 = vmatpush3.bf16.msra.mxu1 %v602_v34 }
  0xf0   :  { %669 = vtanh.f32 %v528_v37  ;;  %v190_v38 = vpop.f32.mrb[9].mxu0  ;;  %v606_v39 = vpack.c.bf16 %v658_v35, %v660_v36 }
  0xf1   :  { %671 = vtanh.f32 %v190_v38 }
  0xf2   :  { %v662_v40 = vpop.eup %661  ;;  %607 = vmatprep.subr.bf16.mxu0 %v606_v39  ;;  %635 = vmatprep.subr.bf16.mxu1 %v606_v39 }
  0xf3   :  { %v664_v41 = vpop.eup %663  ;;  %v531_v42 = vpop.f32.mrb[10].mxu0  ;;  %609 = vmatpush3.bf16.msra.mxu0 %v606_v39  ;;  %643 = vmatpush3.bf16.msra.mxu1 %v606_v39 }
  0xf4   :  { %673 = vtanh.f32 %v531_v42  ;;  %v200_v43 = vpop.f32.mrb[11].mxu0  ;;  %v610_v44 = vpack.c.bf16 %v662_v40, %v664_v41 }
  0xf5   :  { %675 = vtanh.f32 %v200_v43 }
  0xf6   :  { %v666_v45 = vpop.eup %665  ;;  %611 = vmatprep.subr.bf16.mxu0 %v610_v44  ;;  %636 = vmatprep.subr.bf16.mxu1 %v610_v44 }
  0xf7   :  { %v668_v46 = vpop.eup %667  ;;  %v534_v47 = vpop.f32.mrb[12].mxu0  ;;  %613 = vmatpush3.bf16.msra.mxu0 %v610_v44  ;;  %644 = vmatpush3.bf16.msra.mxu1 %v610_v44 }
  0xf8   :  { %677 = vtanh.f32 %v534_v47  ;;  %v210_v48 = vpop.f32.mrb[13].mxu0  ;;  %v614_v49 = vpack.c.bf16 %v666_v45, %v668_v46 }
  0xf9   :  { %679 = vtanh.f32 %v210_v48 }
  0xfa   :  { %v670_v50 = vpop.eup %669  ;;  %615 = vmatprep.subr.bf16.mxu0 %v614_v49  ;;  %637 = vmatprep.subr.bf16.mxu1 %v614_v49 }
  0xfb   :  { %v672_v51 = vpop.eup %671  ;;  %v537_v52 = vpop.f32.mrb[14].mxu0  ;;  %617 = vmatpush3.bf16.msra.mxu0 %v614_v49  ;;  %645 = vmatpush3.bf16.msra.mxu1 %v614_v49 }
  0xfc   :  { %681 = vtanh.f32 %v537_v52  ;;  %v220_v53 = vpop.f32.mrb[15].mxu0  ;;  %v618_v54 = vpack.c.bf16 %v670_v50, %v672_v51 }
  0xfd   :  { %683 = vtanh.f32 %v220_v53 }
  0xfe   :  { %v674_v55 = vpop.eup %673  ;;  %619 = vmatprep.subr.bf16.mxu0 %v618_v54  ;;  %638 = vmatprep.subr.bf16.mxu1 %v618_v54 }
  0xff   :  { %v676_v56 = vpop.eup %675  ;;  %621 = vmatpush3.bf16.msra.mxu0 %v618_v54  ;;  %646 = vmatpush3.bf16.msra.mxu1 %v618_v54 }
 0x100   :  { %v622_v57 = vpack.c.bf16 %v674_v55, %v676_v56 }
 0x102   :  { %v678_v58 = vpop.eup %677  ;;  %623 = vmatprep.subr.bf16.mxu0 %v622_v57  ;;  %639 = vmatprep.subr.bf16.mxu1 %v622_v57 }
 0x103   :  { %v680_v59 = vpop.eup %679  ;;  %625 = vmatpush3.bf16.msra.mxu0 %v622_v57  ;;  %647 = vmatpush3.bf16.msra.mxu1 %v622_v57 }
 0x104   :  { %v626_v60 = vpack.c.bf16 %v678_v58, %v680_v59 }
 0x106   :  { %v682_v61 = vpop.eup %681  ;;  %627 = vmatprep.subr.bf16.mxu0 %v626_v60  ;;  %640 = vmatprep.subr.bf16.mxu1 %v626_v60 }
 0x107   :  { %v684_v62 = vpop.eup %683  ;;  %629 = vmatpush3.bf16.msra.mxu0 %v626_v60  ;;  %648 = vmatpush3.bf16.msra.mxu1 %v626_v60 }
 0x108   :  { %v630_v63 = vpack.c.bf16 %v682_v61, %v684_v62 }
 0x10a   :  { %631 = vmatprep.subr.bf16.mxu0 %v630_v63  ;;  %641 = vmatprep.subr.bf16.mxu1 %v630_v63 }
 0x10b   :  { %633 = vmatpush3.bf16.msra.mxu0 %v630_v63  ;;  %649 = vmatpush3.bf16.msra.mxu1 %v630_v63 }
 0x10e   :  { %580 = vmatmul.mubr.f32.vlgmr.msra.gmra.mrb[0].mxu1 %v252_v0  ;;  %571 = vmatmul.mubr.f32.vlgmr.msra.gmra.mrb[16].mxu0 %v246_v1 }
 0x10f   :  { %582 = vmatprep.mubr.f32.mxu1 %v253_v2  ;;  %573 = vmatprep.mubr.f32.mxu0 %v247_v3 }
 0x112   :  { %583 = vmatmul.mubr.f32.gmra.mrb[2].mxu1 %v254_v4  ;;  %574 = vmatmul.mubr.f32.gmra.mrb[18].mxu0 %v248_v5 }
 0x113   :  { %585 = vmatprep.mubr.f32.mxu1 %v255_v6  ;;  %576 = vmatprep.mubr.f32.mxu0 %v249_v7 }
 0x116   :  { %586 = vmatmul.mubr.f32.gmra.mrb[4].mxu1 %v256_v8  ;;  %577 = vmatmul.mubr.f32.gmra.mrb[20].mxu0 %v250_v9 }
 0x117   :  { %588 = vmatprep.mubr.f32.mxu1 %v257_v10 }
 0x11a   :  { %589 = vmatmul.mubr.f32.gmra.mrb[6].mxu1 %v258_v11 }
 0x11b   :  { %591 = vmatprep.mubr.f32.mxu1 %v259_v12 }
 0x11e   :  { %592 = vmatmul.mubr.f32.gmra.mrb[8].mxu1 %v260_v13 }
 0x1e1   :  { %v581_v14 = vpop.f32.mrb[0].mxu1  ;;  %v572_v15 = vpop.f32.mrb[16].mxu0 }
 0x1e2   :  { %413 = vst [vmem:[#allocation2 + $0x38] sm:$0xff] %v581_v14  ;;  %v357_v16 = vpop.f32.mrb[1].mxu1  ;;  %407 = vst [vmem:[#allocation2 + $0x8] sm:$0xff] %v572_v15  ;;  %v327_v17 = vpop.f32.mrb[17].mxu0 }
 0x1e3   :  { %412 = vst [vmem:[#allocation2 + $0x30] sm:$0xff] %v357_v16  ;;  %406 = vst [vmem:[#allocation2] sm:$0xff] %v327_v17 }
 0x1e5   :  { %v584_v18 = vpop.f32.mrb[2].mxu1  ;;  %v575_v19 = vpop.f32.mrb[18].mxu0 }
 0x1e6   :  { %415 = vst [vmem:[#allocation2 + $0x48] sm:$0xff] %v584_v18  ;;  %v367_v20 = vpop.f32.mrb[3].mxu1  ;;  %409 = vst [vmem:[#allocation2 + $0x18] sm:$0xff] %v575_v19  ;;  %v337_v21 = vpop.f32.mrb[19].mxu0 }
 0x1e7   :  { %414 = vst [vmem:[#allocation2 + $0x40] sm:$0xff] %v367_v20  ;;  %408 = vst [vmem:[#allocation2 + $0x10] sm:$0xff] %v337_v21 }
 0x1e9   :  { %v587_v22 = vpop.f32.mrb[4].mxu1  ;;  %v578_v23 = vpop.f32.mrb[20].mxu0 }
 0x1ea   :  { %417 = vst [vmem:[#allocation2 + $0x58] sm:$0xff] %v587_v22  ;;  %v377_v24 = vpop.f32.mrb[5].mxu1  ;;  %411 = vst [vmem:[#allocation2 + $0x28] sm:$0xff] %v578_v23  ;;  %v347_v25 = vpop.f32.mrb[21].mxu0 }
 0x1eb   :  { %416 = vst [vmem:[#allocation2 + $0x50] sm:$0xff] %v377_v24  ;;  %410 = vst [vmem:[#allocation2 + $0x20] sm:$0xff] %v347_v25 }
 0x1ed   :  { %v590_v26 = vpop.f32.mrb[6].mxu1 }
 0x1ee   :  { %419 = vst [vmem:[#allocation2 + $0x68] sm:$0xff] %v590_v26  ;;  %v387_v27 = vpop.f32.mrb[7].mxu1 }
 0x1ef   :  { %418 = vst [vmem:[#allocation2 + $0x60] sm:$0xff] %v387_v27 }
 0x1f1   :  { %v593_v28 = vpop.f32.mrb[8].mxu1 }
 0x1f2   :  { %421 = vst [vmem:[#allocation2 + $0x78] sm:$0xff] %v593_v28  ;;  %v397_v29 = vpop.f32.mrb[9].mxu1 }
 0x1f3   :  { %420 = vst [vmem:[#allocation2 + $0x70] sm:$0xff] %v397_v29 }
 0x1f4   :  { %696 = shalt.err (!%p693_p4)
}
 0x1f5   :  { %s697_s29 = scalar_lea.hbm %s871_s3, 2048 }
 0x1f6   :  { %p698_p5 = scmp.ne.s32.totalorder %s871_s3, %s697_s29  ;;  %p701_p6 = scmp.lt.u32.totalorder %s697_s29, %s871_s3 }
 0x1f8   :  { %p703_p7 = pnand %p701_p6, %p698_p5 }
 0x1fa   :  { %706 = shalt.err (!%p703_p7)
}
 0x1fb   :  { %s710_s7 = smov 128   ;;  %s711_s8 = smov 8  }
 0x1fc   :  { %433 = dma.vmem_to_hbm [thread:$0]  %s428_s26, 2048, %s871_s3, [#allocation3], %s710_s7, %s710_s7, %s711_s8  }
 0x1fd   :  { %707 = dma.done.wait [#allocation3], 2048  }
 0x1fe   :  { %708 = vsyncadd [#allocation3], 4294965248 }
 0x1ff   :  { %437 = vsyncpa [#allocation3], 1 }

</bundles_post_ra>
